<compile_context>
chip_gen: v7x
topology: tpu7x:2x2x1
jax: 0.10.0
libtpu: 0.0.40
codegen_flags: <defaults>
</compile_context>

<pallas_src>
import functools
import math

import jax
import jax.numpy as jnp
from jax import lax
from jax.experimental import pallas as pl
from jax.experimental.pallas import tpu as pltpu

_VMEM_LIMIT_BYTES = 64 * 1024 * 1024


def _pick_tile(n, target):
    """Largest divisor of n that is <= target (falls back to n itself)."""
    if n <= target:
        return n
    for t in range(target, 0, -1):
        if n % t == 0:
            return t
    return n


# ------------------- fused, row-tiled projection kernel ---------------------

def _proj_kernel(*refs, n_mats, has_bias):
    # refs = (x_ref, w_0..w_{n-1}, [b_0..b_{n-1}], o_0..o_{n-1})
    x = refs[0][...]
    w_refs = refs[1:1 + n_mats]
    off = 1 + n_mats
    if has_bias:
        b_refs = refs[off:off + n_mats]
        off += n_mats
    else:
        b_refs = (None,) * n_mats
    o_refs = refs[off:off + n_mats]
    for w_ref, b_ref, o_ref in zip(w_refs, b_refs, o_refs):
        acc = jnp.dot(x, w_ref[...], preferred_element_type=jnp.float32)
        if b_ref is not None:
            acc = acc + b_ref[...]
        o_ref[...] = acc.astype(o_ref.dtype)


def pallas_projection(x2d, weights, biases=None, *, tile_m=512):
    """Compute x2d @ W_i (+ b_i) for every weight in one row-tiled launch.

    x2d: (R, Cin); weights[i]: (Cin, Cout_i); biases[i]: (1, Cout_i) or None.
    Returns a tuple of (R, Cout_i) arrays. The activation tile is read once
    per grid step and reused for all weights.
    """
    R, Cin = x2d.shape
    n = len(weights)
    has_bias = biases is not None
    tm = min(tile_m, R)                      # tm == R or multiple of 8 (512)
    grid = (pl.cdiv(R, tm),)

    in_specs = [pl.BlockSpec((tm, Cin), lambda i: (i, 0))]
    for w in weights:
        in_specs.append(pl.BlockSpec(w.shape, lambda i: (0, 0)))
    if has_bias:
        for b in biases:
            in_specs.append(pl.BlockSpec(b.shape, lambda i: (0, 0)))

    out_specs = [pl.BlockSpec((tm, w.shape[1]), lambda i: (i, 0))
                 for w in weights]
    out_shape = [jax.ShapeDtypeStruct((R, w.shape[1]), x2d.dtype)
                 for w in weights]

    cout_total = sum(int(w.shape[1]) for w in weights)
    itemsize = x2d.dtype.itemsize
    flops = 2 * R * Cin * cout_total
    bytes_accessed = (R * Cin * itemsize
                      + sum(int(w.size) * w.dtype.itemsize for w in weights)
                      + R * cout_total * itemsize)

    outs = pl.pallas_call(
        functools.partial(_proj_kernel, n_mats=n, has_bias=has_bias),
        out_shape=out_shape,
        grid=grid,
        in_specs=in_specs,
        out_specs=out_specs,
        compiler_params=pltpu.CompilerParams(
            dimension_semantics=("parallel",),
            vmem_limit_bytes=_VMEM_LIMIT_BYTES),
        cost_estimate=pl.CostEstimate(
            flops=int(flops), transcendentals=0,
            bytes_accessed=int(bytes_accessed)),
    )(x2d, *weights, *(tuple(biases) if has_bias else ()))
    if not isinstance(outs, (list, tuple)):
        outs = (outs,)
    return tuple(outs)


# --------------------- flash attention (online softmax) ---------------------

def _flash_attn_kernel(q_ref, k_ref, v_ref, o_ref, m_sc, l_sc, acc_sc):
    # q_ref: (1, TQ, Dh), k_ref/v_ref: (1, TK, Dh), o_ref: (1, TQ, Dh)
    ki = pl.program_id(2)

    @pl.when(ki == 0)
    def _():
        m_sc[...] = jnp.full(m_sc.shape, -jnp.inf, m_sc.dtype)
        l_sc[...] = jnp.zeros(l_sc.shape, l_sc.dtype)
        acc_sc[...] = jnp.zeros(acc_sc.shape, acc_sc.dtype)

    q = q_ref[0]                             # (TQ, Dh), scale already in Wq
    k = k_ref[0]                             # (TK, Dh)
    v = v_ref[0]                             # (TK, Dh)

    # Scores: clean 2-D MXU matmul with TK lane-dense.  (TQ, TK)
    s = lax.dot_general(q, k, (((1,), (1,)), ((), ())),
                        preferred_element_type=jnp.float32)

    m_prev = m_sc[...]                                        # (TQ, 1)
    m_new = jnp.maximum(m_prev, s.max(axis=-1, keepdims=True))
    alpha = jnp.exp(m_prev - m_new)
    p = jnp.exp(s - m_new)                                    # unnormalized
    l_sc[...] = alpha * l_sc[...] + p.sum(axis=-1, keepdims=True)
    pv = jnp.dot(p.astype(v.dtype), v,
                 preferred_element_type=jnp.float32)          # (TQ, Dh)
    acc_sc[...] = alpha * acc_sc[...] + pv
    m_sc[...] = m_new

    @pl.when(ki == pl.num_programs(2) - 1)
    def _():
        # Normalize once per query tile (epilogue); approximate reciprocal
        # runs on the EUP slot.  Single contiguous (TQ, Dh) store.
        inv_l = pl.reciprocal(l_sc[...], approx=True)         # (TQ, 1)
        o_ref[0] = (acc_sc[...] * inv_l).astype(o_ref.dtype)


def pallas_flash_attention(q, k, v, *, tile_q=256, tile_k=512):
    """q: (BH, N, Dh), k/v: (BH, M, Dh) -> (BH, N, Dh).  Scale pre-applied."""
    BH, N, Dh = q.shape
    M = k.shape[1]
    # Tiles must evenly divide the sequence lengths (no key masking needed).
    tq = _pick_tile(N, tile_q)
    tk = _pick_tile(M, tile_k)
    grid = (BH, N // tq, M // tk)

    itemsize = q.dtype.itemsize
    flops = 4 * BH * N * M * Dh               # QK^T + PV
    transcendentals = BH * N * M              # exp
    kv_revisits = N // tq
    bytes_accessed = (q.size * itemsize
                      + (k.size + v.size) * itemsize * kv_revisits
                      + q.size * itemsize)

    return pl.pallas_call(
        _flash_attn_kernel,
        out_shape=jax.ShapeDtypeStruct((BH, N, Dh), q.dtype),
        grid=grid,
        in_specs=[
            pl.BlockSpec((1, tq, Dh), lambda b, qi, ki: (b, qi, 0)),
            pl.BlockSpec((1, tk, Dh), lambda b, qi, ki: (b, ki, 0)),
            pl.BlockSpec((1, tk, Dh), lambda b, qi, ki: (b, ki, 0)),
        ],
        out_specs=pl.BlockSpec((1, tq, Dh), lambda b, qi, ki: (b, qi, 0)),
        scratch_shapes=[
            pltpu.VMEM((tq, 1), jnp.float32),    # running max m
            pltpu.VMEM((tq, 1), jnp.float32),    # running denom l
            pltpu.VMEM((tq, Dh), jnp.float32),   # running acc
        ],
        compiler_params=pltpu.CompilerParams(
            dimension_semantics=("parallel", "parallel", "arbitrary"),
            vmem_limit_bytes=_VMEM_LIMIT_BYTES),
        cost_estimate=pl.CostEstimate(
            flops=int(flops), transcendentals=int(transcendentals),
            bytes_accessed=int(bytes_accessed)),
    )(q, k, v)


# ------------------------------ module wrapper -------------------------------

class MemoryEfficientCrossAttention:
    def __init__(self, query_dim, context_dim=None, heads=8, dim_head=64,
                 dropout=0.0, key=None):
        inner_dim = dim_head * heads
        context_dim = query_dim if context_dim is None else context_dim
        self.heads = heads
        self.dim_head = dim_head
        self.query_dim = query_dim
        self.context_dim = context_dim
        self.inner_dim = inner_dim
        self.scale = 1.0 / math.sqrt(dim_head)
        # dropout == 0.0 / eval mode -> identity at inference.

        if key is None:
            key = jax.random.PRNGKey(0)
        kq, kk, kv, ko, kb = jax.random.split(key, 5)

        def init_w(k, fan_in, fan_out):
            bound = 1.0 / math.sqrt(fan_in)
            # stored as (fan_in, fan_out), i.e. already transposed for x @ W
            return jax.random.uniform(k, (fan_in, fan_out), jnp.float32,
                                      -bound, bound)

        self.Wq = init_w(kq, query_dim, inner_dim)
        self.Wk = init_w(kk, context_dim, inner_dim)
        self.Wv = init_w(kv, context_dim, inner_dim)
        self.Wo = init_w(ko, inner_dim, query_dim)
        bound = 1.0 / math.sqrt(inner_dim)
        self.bo = jax.random.uniform(kb, (1, query_dim), jnp.float32,
                                     -bound, bound)
        # Fold the attention scale into Wq once: (x @ (Wq*s)) k^T == (x@Wq) k^T * s.
        self.Wq_scaled = self.Wq * self.scale

    def _split_heads(self, t2d, B, S):
        # (B*S, H*Dh) -> (B*H, S, Dh); same permute the PyTorch module performs.
        H, Dh = self.heads, self.dim_head
        return (t2d.reshape(B, S, H, Dh)
                   .transpose(0, 2, 1, 3)
                   .reshape(B * H, S, Dh))

    def __call__(self, x, context=None, mask=None):
        if mask is not None:
            raise NotImplementedError
        B, N, _ = x.shape
        H, Dh = self.heads, self.dim_head
        inner = self.inner_dim
        x2d = x.reshape(B * N, self.query_dim)

        if context is None:
            # Self-attention: fused QKV projection, x read once.
            q2d, k2d, v2d = pallas_projection(
                x2d, [self.Wq_scaled, self.Wk, self.Wv])
            M = N
        else:
            M = context.shape[1]
            ctx2d = context.reshape(B * M, self.context_dim)
            (q2d,) = pallas_projection(x2d, [self.Wq_scaled])
            k2d, v2d = pallas_projection(ctx2d, [self.Wk, self.Wv])

        # Head split (cheap XLA transposes, O(N*inner) vs O(N*M*inner) attn).
        q = self._split_heads(q2d, B, N)          # (B*H, N, Dh)
        k = self._split_heads(k2d, B, M)          # (B*H, M, Dh)
        v = self._split_heads(v2d, B, M)          # (B*H, M, Dh)

        out = pallas_flash_attention(q, k, v)     # (B*H, N, Dh)
        out2d = (out.reshape(B, H, N, Dh)
                    .transpose(0, 2, 1, 3)
                    .reshape(B * N, inner))

        # Output projection (with bias); Dropout(0.0) is identity.
        (out2d,) = pallas_projection(out2d, [self.Wo], biases=[self.bo])
        return out2d.reshape(B, N, self.query_dim)


# --------------------------------- reference ---------------------------------

def reference_forward(mod, x, context=None):
    context = x if context is None else context
    B, N, _ = x.shape
    M = context.shape[1]
    H, Dh = mod.heads, mod.dim_head
    q = x.reshape(B * N, -1) @ mod.Wq
    k = context.reshape(B * M, -1) @ mod.Wk
    v = context.reshape(B * M, -1) @ mod.Wv
    q = q.reshape(B, N, H, Dh).transpose(0, 2, 1, 3)
    k = k.reshape(B, M, H, Dh).transpose(0, 2, 1, 3)
    v = v.reshape(B, M, H, Dh).transpose(0, 2, 1, 3)
    s = jnp.einsum("bhnd,bhmd->bhnm", q, k) / math.sqrt(Dh)
    p = jax.nn.softmax(s, axis=-1)
    o = jnp.einsum("bhnm,bhmd->bhnd", p, v)
    o = o.transpose(0, 2, 1, 3).reshape(B * N, H * Dh)
    o = o @ mod.Wo + mod.bo
    return o.reshape(B, N, -1)


# ----------------------------------- main ------------------------------------

if __name__ == "__main__":
    key = jax.random.PRNGKey(0)
    kx, kc, kp1, kp2 = jax.random.split(key, 4)

    B, N = 2, 8
    query_dim = 32
    heads, dim_head = 2, 16          # inner_dim = 32

    x = jax.random.normal(kx, (B, N, query_dim), jnp.float32)

    # --- self-attention path (context=None) ---
    mod = MemoryEfficientCrossAttention(query_dim=query_dim, context_dim=None,
                                        heads=heads, dim_head=dim_head,
                                        dropout=0.0, key=kp1)
    out = jax.block_until_ready(mod(x))
    ref = reference_forward(mod, x)
    assert out.shape == (B, N, query_dim)
    err = jnp.max(jnp.abs(out - ref))
    # Tolerance accounts for the approximate EUP reciprocal in the epilogue.
    assert jnp.allclose(out, ref, atol=5e-3, rtol=5e-3), \
        f"self-attn max abs err {err}"

    # --- cross-attention path ---
    M_ctx, context_dim = 12, 48
    mod2 = MemoryEfficientCrossAttention(query_dim=query_dim,
                                         context_dim=context_dim,
                                         heads=heads, dim_head=dim_head,
                                         dropout=0.0, key=kp2)
    ctx = jax.random.normal(kc, (B, M_ctx, context_dim), jnp.float32)
    out2 = jax.block_until_ready(mod2(x, context=ctx))
    ref2 = reference_forward(mod2, x, ctx)
    assert out2.shape == (B, N, query_dim)
    err2 = jnp.max(jnp.abs(out2 - ref2))
    assert jnp.allclose(out2, ref2, atol=5e-3, rtol=5e-3), \
        f"cross-attn max abs err {err2}"

    print("KERNEL_OK")
</pallas_src>

<mosaic_0001>
module attributes {stable_mosaic.version = 11 : i64} {
  func.func @_proj_kernel(%arg0: i32, %arg1: memref<16x32xf32, #tpu.memory_space<vmem>>, %arg2: memref<32x32xf32, #tpu.memory_space<vmem>>, %arg3: memref<32x32xf32, #tpu.memory_space<vmem>>, %arg4: memref<32x32xf32, #tpu.memory_space<vmem>>, %arg5: memref<16x32xf32, #tpu.memory_space<vmem>>, %arg6: memref<16x32xf32, #tpu.memory_space<vmem>>, %arg7: memref<16x32xf32, #tpu.memory_space<vmem>>) attributes {dimension_semantics = [#tpu.dimension_semantics<parallel>], iteration_bounds = array<i64: 1>, scalar_prefetch = 0 : i64, scratch_operands = 0 : i64, tpu.core_type = #tpu.core_type<tc>, window_params = [{transform_indices = @transform_0, window_bounds = array<i64: 16, 32>}, {pipeline_mode = #tpu.pipeline_mode<synchronous>, transform_indices = @transform_1, window_bounds = array<i64: 32, 32>}, {pipeline_mode = #tpu.pipeline_mode<synchronous>, transform_indices = @transform_2, window_bounds = array<i64: 32, 32>}, {pipeline_mode = #tpu.pipeline_mode<synchronous>, transform_indices = @transform_3, window_bounds = array<i64: 32, 32>}, {transform_indices = @transform_4, window_bounds = array<i64: 16, 32>}, {transform_indices = @transform_5, window_bounds = array<i64: 16, 32>}, {transform_indices = @transform_6, window_bounds = array<i64: 16, 32>}]} {
    %c0 = arith.constant 0 : index
    %c0_0 = arith.constant 0 : index
    %0 = vector.load %arg1[%c0, %c0_0] : memref<16x32xf32, #tpu.memory_space<vmem>>, vector<16x32xf32>
    %c0_1 = arith.constant 0 : index
    %c0_2 = arith.constant 0 : index
    %1 = vector.load %arg2[%c0_1, %c0_2] : memref<32x32xf32, #tpu.memory_space<vmem>>, vector<32x32xf32>
    %cst = arith.constant dense<0.000000e+00> : vector<16x32xf32>
    %2 = tpu.matmul %0, %1, %cst {dimension_numbers = #tpu.dot_dimension_numbers<[1], [0], [0], [1], [0, 0, 1, 1], [], []>} : vector<16x32xf32>, vector<32x32xf32>, vector<16x32xf32> -> vector<16x32xf32>
    %c0_3 = arith.constant 0 : index
    %c0_4 = arith.constant 0 : index
    %3 = vector.load %arg5[%c0_3, %c0_4] : memref<16x32xf32, #tpu.memory_space<vmem>>, vector<16x32xf32>
    tpu.vector_store %arg5[%c0_3, %c0_4], %2 {strides = array<i32>} : memref<16x32xf32, #tpu.memory_space<vmem>>, vector<16x32xf32>,
    %c0_5 = arith.constant 0 : index
    %c0_6 = arith.constant 0 : index
    %4 = vector.load %arg3[%c0_5, %c0_6] : memref<32x32xf32, #tpu.memory_space<vmem>>, vector<32x32xf32>
    %cst_7 = arith.constant dense<0.000000e+00> : vector<16x32xf32>
    %5 = tpu.matmul %0, %4, %cst_7 {dimension_numbers = #tpu.dot_dimension_numbers<[1], [0], [0], [1], [0, 0, 1, 1], [], []>} : vector<16x32xf32>, vector<32x32xf32>, vector<16x32xf32> -> vector<16x32xf32>
    %c0_8 = arith.constant 0 : index
    %c0_9 = arith.constant 0 : index
    %6 = vector.load %arg6[%c0_8, %c0_9] : memref<16x32xf32, #tpu.memory_space<vmem>>, vector<16x32xf32>
    tpu.vector_store %arg6[%c0_8, %c0_9], %5 {strides = array<i32>} : memref<16x32xf32, #tpu.memory_space<vmem>>, vector<16x32xf32>,
    %c0_10 = arith.constant 0 : index
    %c0_11 = arith.constant 0 : index
    %7 = vector.load %arg4[%c0_10, %c0_11] : memref<32x32xf32, #tpu.memory_space<vmem>>, vector<32x32xf32>
    %cst_12 = arith.constant dense<0.000000e+00> : vector<16x32xf32>
    %8 = tpu.matmul %0, %7, %cst_12 {dimension_numbers = #tpu.dot_dimension_numbers<[1], [0], [0], [1], [0, 0, 1, 1], [], []>} : vector<16x32xf32>, vector<32x32xf32>, vector<16x32xf32> -> vector<16x32xf32>
    %c0_13 = arith.constant 0 : index
    %c0_14 = arith.constant 0 : index
    %9 = vector.load %arg7[%c0_13, %c0_14] : memref<16x32xf32, #tpu.memory_space<vmem>>, vector<16x32xf32>
    tpu.vector_store %arg7[%c0_13, %c0_14], %8 {strides = array<i32>} : memref<16x32xf32, #tpu.memory_space<vmem>>, vector<16x32xf32>,
    return
  }
  func.func @transform_0(%arg0: i32) -> (i32, i32) {
    %c0_i32 = arith.constant 0 : i32
    %c0_i32_0 = arith.constant 0 : i32
    return %arg0, %c0_i32 : i32, i32
  }
  func.func @transform_1(%arg0: i32) -> (i32, i32) {
    %c0_i32 = arith.constant 0 : i32
    %c0_i32_0 = arith.constant 0 : i32
    %c0_i32_1 = arith.constant 0 : i32
    return %c0_i32, %c0_i32_0 : i32, i32
  }
  func.func @transform_2(%arg0: i32) -> (i32, i32) {
    %c0_i32 = arith.constant 0 : i32
    %c0_i32_0 = arith.constant 0 : i32
    %c0_i32_1 = arith.constant 0 : i32
    return %c0_i32, %c0_i32_0 : i32, i32
  }
  func.func @transform_3(%arg0: i32) -> (i32, i32) {
    %c0_i32 = arith.constant 0 : i32
    %c0_i32_0 = arith.constant 0 : i32
    %c0_i32_1 = arith.constant 0 : i32
    return %c0_i32, %c0_i32_0 : i32, i32
  }
  func.func @transform_4(%arg0: i32) -> (i32, i32) {
    %c0_i32 = arith.constant 0 : i32
    %c0_i32_0 = arith.constant 0 : i32
    return %arg0, %c0_i32 : i32, i32
  }
  func.func @transform_5(%arg0: i32) -> (i32, i32) {
    %c0_i32 = arith.constant 0 : i32
    %c0_i32_0 = arith.constant 0 : i32
    return %arg0, %c0_i32 : i32, i32
  }
  func.func @transform_6(%arg0: i32) -> (i32, i32) {
    %c0_i32 = arith.constant 0 : i32
    %c0_i32_0 = arith.constant 0 : i32
    return %arg0, %c0_i32 : i32, i32
  }
}

</mosaic_0001>

<bundles_post_ra>
// kernel: tpu_custom_call.1
= control target key start
LH: loop header
LB: loop body
LE: loop exit
PB: predicated region body
PF: predicated region fallthrough
CT: control target
= control target key end

     0   :  { %12 = vsyncpa [#allocation3], 0  ;;  %s815_s0 = inlined_call_operand.hbm [shape: f32[16,32], index: 0, kind: input, shape index: {}]   ;;  %s816_s1 = inlined_call_operand.hbm [shape: f32[32,32], index: 1, kind: input, shape index: {}]   ;;  %s817_s2 = inlined_call_operand.hbm [shape: f32[32,32], index: 2, kind: input, shape index: {}]   ;;  %s818_s3 = inlined_call_operand.hbm [shape: f32[32,32], index: 3, kind: input, shape index: {}]   ;;  %s819_s4 = inlined_call_operand.hbm [shape: f32[16,32], index: 4, kind: output, shape index: {0}]   ;;  %s820_s5 = inlined_call_operand.hbm [shape: f32[16,32], index: 5, kind: output, shape index: {1}]   ;;  %s821_s6 = inlined_call_operand.hbm [shape: f32[16,32], index: 6, kind: output, shape index: {2}]  }
   0x1   :  { %13 = vsyncpa [#allocation6], 0 }
   0x2   :  { %14 = vsyncpa [#allocation9], 0 }
   0x3   :  { %15 = vsyncpa [#allocation4], 0 }
   0x4   :  { %16 = vsyncpa [#allocation12], 0  ;;  %s633_s21 = smov [#allocation5]   ;;  %s634_s23 = smov [#allocation2]  }
   0x5   :  { %s34_s22 = sshll.u32 %s633_s21, 4  ;;  %s22_s24 = sshll.u32 %s634_s23, 4  ;;  %s35_s22 = int_to_ptr.vmem [resolvable:$true] %s34_s22  ;;  %s677_s24 = int_to_ptr.vmem [resolvable:$true] %s22_s24 }
   0x6   :  { %s469_s27 = scalar_lea.hbm %s816_s1, 512 }
   0x7   :  { %p470_p0 = scmp.ne.s32.totalorder %s816_s1, %s469_s27  ;;  %p473_p1 = scmp.lt.u32.totalorder %s469_s27, %s816_s1 }
   0x9   :  { %p475_p2 = pnand %p473_p1, %p470_p0 }
   0xb   :  { %478 = shalt.err (!%p475_p2)
}
   0xc   :  { %s479_s8 = scalar_lea.vmem %s35_s22, 512  ;;  %p484_p4 = scmp.lt.s32.totalorder %s35_s22, %s35_s22 }
   0xd   :  { %p480_p3 = scmp.ne.s32.totalorder %s35_s22, %s479_s8  ;;  %p485_p5 = scmp.lt.s32.totalorder %s479_s8, %s479_s8 }
   0xf   :  { %p486_p6 = por %p485_p5, %p484_p4 }
  0x11   :  { %p487_p7 = pnand %p486_p6, %p480_p3 }
  0x13   :  { %490 = shalt.err (!%p487_p7)
}
  0x14   :  { %s635_s9 = smov 128   ;;  %s636_s10 = smov 8  }
  0x15   :  { %40 = dma.hbm_to_vmem [thread:$0]  %s816_s1, 512, %s35_s22, [#allocation6], %s635_s9, %s635_s9, %s636_s10  }
  0x16   :  { %s491_s15 = scalar_lea.hbm %s815_s0, 256 }
  0x17   :  { %p492_p8 = scmp.ne.s32.totalorder %s815_s0, %s491_s15  ;;  %p495_p9 = scmp.lt.u32.totalorder %s491_s15, %s815_s0 }
  0x19   :  { %p497_p10 = pnand %p495_p9, %p492_p8 }
  0x1b   :  { %500 = shalt.err (!%p497_p10)
}
  0x1c   :  { %s501_s20 = scalar_lea.vmem %s677_s24, 256  ;;  %p506_p12 = scmp.lt.s32.totalorder %s677_s24, %s677_s24 }
  0x1d   :  { %p502_p11 = scmp.ne.s32.totalorder %s677_s24, %s501_s20  ;;  %p507_p13 = scmp.lt.s32.totalorder %s501_s20, %s501_s20 }
  0x1f   :  { %p508_p0 = por %p507_p13, %p506_p12 }
  0x21   :  { %p509_p1 = pnand %p508_p0, %p502_p11 }
  0x23   :  { %512 = shalt.err (!%p509_p1)
}
  0x24   :  { %28 = dma.hbm_to_vmem [thread:$0]  %s815_s0, 256, %s677_s24, [#allocation3], %s635_s9, %s635_s9, %s636_s10  }
  0x25   :  { %s637_s22 = smov [#allocation7]   ;;  %s638_s25 = smov [#allocation8]  }
  0x26   :  { %s46_s23 = sshll.u32 %s637_s22, 4  ;;  %s58_s26 = sshll.u32 %s638_s25, 4  ;;  %s47_s23 = int_to_ptr.vmem [resolvable:$true] %s46_s23  ;;  %s714_s26 = int_to_ptr.vmem [resolvable:$true] %s58_s26 }
  0x27   :  { %s513_s29 = scalar_lea.hbm %s817_s2, 512 }
  0x28   :  { %p514_p2 = scmp.ne.s32.totalorder %s817_s2, %s513_s29  ;;  %p517_p3 = scmp.lt.u32.totalorder %s513_s29, %s817_s2 }
  0x2a   :  { %p519_p4 = pnand %p517_p3, %p514_p2 }
  0x2c   :  { %522 = shalt.err (!%p519_p4)
}
  0x2d   :  { %s523_s0 = scalar_lea.vmem %s47_s23, 512  ;;  %p528_p6 = scmp.lt.s32.totalorder %s47_s23, %s47_s23 }
  0x2e   :  { %p524_p5 = scmp.ne.s32.totalorder %s47_s23, %s523_s0  ;;  %p529_p7 = scmp.lt.s32.totalorder %s523_s0, %s523_s0 }
  0x30   :  { %p530_p8 = por %p529_p7, %p528_p6 }
  0x32   :  { %p531_p9 = pnand %p530_p8, %p524_p5 }
  0x34   :  { %534 = shalt.err (!%p531_p9)
}
  0x35   :  { %52 = dma.hbm_to_vmem [thread:$0]  %s817_s2, 512, %s47_s23, [#allocation6], %s635_s9, %s635_s9, %s636_s10  }
  0x36   :  { %s535_s15 = scalar_lea.hbm %s818_s3, 512 }
  0x37   :  { %p536_p10 = scmp.ne.s32.totalorder %s818_s3, %s535_s15  ;;  %p539_p11 = scmp.lt.u32.totalorder %s535_s15, %s818_s3 }
  0x39   :  { %p541_p12 = pnand %p539_p11, %p536_p10 }
  0x3b   :  { %544 = shalt.err (!%p541_p12)
}
  0x3c   :  { %s545_s20 = scalar_lea.vmem %s714_s26, 512  ;;  %p550_p0 = scmp.lt.s32.totalorder %s714_s26, %s714_s26 }
  0x3d   :  { %p546_p13 = scmp.ne.s32.totalorder %s714_s26, %s545_s20  ;;  %p551_p1 = scmp.lt.s32.totalorder %s545_s20, %s545_s20 }
  0x3f   :  { %p552_p2 = por %p551_p1, %p550_p0 }
  0x41   :  { %p553_p3 = pnand %p552_p2, %p546_p13 }
  0x43   :  { %556 = shalt.err (!%p553_p3)
}
  0x44   :  { %64 = dma.hbm_to_vmem [thread:$0]  %s818_s3, 512, %s714_s26, [#allocation9], %s635_s9, %s635_s9, %s636_s10  }
  0x45   :  { %623 = dma.done.wait [#allocation3], 256  }
  0x46   :  { %624 = vsyncadd [#allocation3], 4294967040 }
  0x47   :  { %625 = dma.done.wait [#allocation6], 1024  }
  0x48   :  { %626 = vsyncadd [#allocation6], 4294966272 }
  0x49   :  { %627 = dma.done.wait [#allocation9], 512  }
  0x4a   :  { %628 = vsyncadd [#allocation9], 4294966784  ;;  %v79_v0 = vld [vmem:[#allocation5] sm:$0xff]  ;;  %v80_v1 = vld [vmem:[#allocation5 + $0x8] sm:$0xff]  ;;  %vm83_vm0 = vcmask 261120   ;;  %s639_s3 = smov [#allocation10]  }
  0x4b   :  { %v81_v2 = vld [vmem:[#allocation5 + $0x10] sm:$0xff]  ;;  %v436_v3 = vpack.c.bf16 %v80_v1, %v79_v0  ;;  %v82_v4 = vld [vmem:[#allocation5 + $0x18] sm:$0xff]  ;;  %v167_v5 = vld [vmem:[#allocation7] sm:$0xff]  ;;  %s334_s21 = sshll.u32 %s639_s3, 4  ;;  %s640_s22 = smov [#allocation11]   ;;  %s335_s21 = int_to_ptr.vmem [resolvable:$true] %s334_s21 }
  0x4c   :  { %v168_v6 = vld [vmem:[#allocation7 + $0x8] sm:$0xff]  ;;  %v440_v7 = vpack.c.bf16 %v82_v4, %v81_v2  ;;  %v77_v9 = vld [vmem:[#allocation2] sm:$0xff]  ;;  %v248_v10 = vld [vmem:[#allocation8] sm:$0xff]  ;;  %s346_s23 = sshll.u32 %s640_s22, 4  ;;  %s557_s25 = scalar_lea.vmem %s335_s21, 256  ;;  %s758_s23 = int_to_ptr.vmem [resolvable:$true] %s346_s23 }
  0x4d   :  { %v444_v8 = vpack.c.bf16 %v168_v6, %v167_v5  ;;  %437 = vmatprep.subr.bf16.mxu0 %v436_v3  ;;  %411 = vmatprep.mubr.msk.f32.mxu0 %vm83_vm0, %v77_v9  ;;  %v249_v11 = vld [vmem:[#allocation8 + $0x8] sm:$0xff]  ;;  %v169_v12 = vld [vmem:[#allocation7 + $0x10] sm:$0xff]  ;;  %v170_v13 = vld [vmem:[#allocation7 + $0x18] sm:$0xff]  ;;  %p558_p4 = scmp.ne.s32.totalorder %s335_s21, %s557_s25  ;;  %p562_p5 = scmp.lt.s32.totalorder %s335_s21, %s335_s21 }
  0x4e   :  { %439 = vmatpush3.bf16.msra.mxu0 %v436_v3  ;;  %v448_v14 = vpack.c.bf16 %v170_v13, %v169_v12  ;;  %v452_v15 = vpack.c.bf16 %v249_v11, %v248_v10  ;;  %v250_v16 = vld [vmem:[#allocation8 + $0x10] sm:$0xff]  ;;  %v251_v17 = vld [vmem:[#allocation8 + $0x18] sm:$0xff]  ;;  %422 = vmatprep.mubr.msk.f32.mxu1 %vm83_vm0, %v77_v9  ;;  %p563_p6 = scmp.lt.s32.totalorder %s557_s25, %s557_s25 }
  0x4f   :  { %445 = vmatprep.subr.bf16.mxu1 %v444_v8  ;;  %441 = vmatprep.subr.bf16.mxu0 %v440_v7  ;;  %v78_v18 = vld [vmem:[#allocation2 + $0x8] sm:$0xff]  ;;  %v456_v19 = vpack.c.bf16 %v251_v17, %v250_v16 }
  0x50   :  { %447 = vmatpush3.bf16.msra.mxu1 %v444_v8  ;;  %p564_p7 = por %p563_p6, %p562_p5 }
  0x51   :  { %449 = vmatprep.subr.bf16.mxu1 %v448_v14 }
  0x52   :  { %443 = vmatpush3.bf16.msra.mxu0 %v440_v7  ;;  %p565_p8 = pnand %p564_p7, %p558_p4 }
  0x53   :  { %453 = vmatprep.subr.bf16.mxu0 %v452_v15 }
  0x54   :  { %451 = vmatpush3.bf16.msra.mxu1 %v448_v14 }
  0x55   :  { %412 = vmatmul.mubr.msk.f32.vlgmr.msra.gmra.mrb[0].mxu0 %vm83_vm0, %v78_v18 }
  0x56   :  { %455 = vmatpush3.bf16.msra.mxu0 %v452_v15  ;;  %433 = vmatprep.mubr.msk.f32.mxu0 %vm83_vm0, %v77_v9 }
  0x57   :  { %423 = vmatmul.mubr.msk.f32.vlgmr.msra.gmra.mrb[0].mxu1 %vm83_vm0, %v78_v18  ;;  %457 = vmatprep.subr.bf16.mxu0 %v456_v19 }
  0x5a   :  { %459 = vmatpush3.bf16.msra.mxu0 %v456_v19 }
  0x5d   :  { %434 = vmatmul.mubr.msk.f32.vlgmr.msra.gmra.mrb[2].mxu0 %vm83_vm0, %v78_v18 }
 0x128   :  { %v413_v20 = vpop.f32.mrb[0].mxu0 }
 0x129   :  { %166 = vst.msk [vmem:[#allocation10 + $0x8] sm:$0xff] %vm83_vm0, %v413_v20  ;;  %v156_v21 = vpop.f32.mrb[1].mxu0 }
 0x12a   :  { %v424_v22 = vpop.f32.mrb[0].mxu1  ;;  %165 = vst.msk [vmem:[#allocation10] sm:$0xff] %vm83_vm0, %v156_v21 }
 0x12b   :  { %247 = vst.msk [vmem:[#allocation11 + $0x8] sm:$0xff] %vm83_vm0, %v424_v22  ;;  %v237_v23 = vpop.f32.mrb[1].mxu1 }
 0x12c   :  { %246 = vst.msk [vmem:[#allocation11] sm:$0xff] %vm83_vm0, %v237_v23 }
 0x12d   :  { %568 = shalt.err (!%p565_p8)
}
 0x12e   :  { %s569_s28 = scalar_lea.hbm %s819_s4, 256 }
 0x12f   :  { %p570_p9 = scmp.ne.s32.totalorder %s819_s4, %s569_s28  ;;  %p573_p10 = scmp.lt.u32.totalorder %s569_s28, %s819_s4 }
 0x131   :  { %p575_p11 = pnand %p573_p10, %p570_p9 }
 0x133   :  { %578 = shalt.err (!%p575_p11)
}
 0x134   :  { %340 = dma.vmem_to_hbm [thread:$0]  %s335_s21, 256, %s819_s4, [#allocation4], %s635_s9, %s635_s9, %s636_s10  }
 0x135   :  { %s579_s24 = scalar_lea.vmem %s758_s23, 256  ;;  %p584_p13 = scmp.lt.s32.totalorder %s758_s23, %s758_s23 }
 0x136   :  { %p580_p12 = scmp.ne.s32.totalorder %s758_s23, %s579_s24  ;;  %p585_p0 = scmp.lt.s32.totalorder %s579_s24, %s579_s24 }
 0x138   :  { %p586_p1 = por %p585_p0, %p584_p13 }
 0x13a   :  { %p587_p2 = pnand %p586_p1, %p580_p12 }
 0x13c   :  { %590 = shalt.err (!%p587_p2)
}
 0x13d   :  { %s591_s14 = scalar_lea.hbm %s820_s5, 256 }
 0x13e   :  { %p592_p3 = scmp.ne.s32.totalorder %s820_s5, %s591_s14  ;;  %p595_p4 = scmp.lt.u32.totalorder %s591_s14, %s820_s5 }
 0x140   :  { %p597_p5 = pnand %p595_p4, %p592_p3 }
 0x142   :  { %600 = shalt.err (!%p597_p5)
}
 0x143   :  { %352 = dma.vmem_to_hbm [thread:$0]  %s758_s23, 256, %s820_s5, [#allocation12], %s635_s9, %s635_s9, %s636_s10   ;;  %v435_v24 = vpop.f32.mrb[2].mxu0 }
 0x144   :  { %s641_s20 = smov [#allocation13]   ;;  %328 = vst.msk [vmem:[#allocation13 + $0x8] sm:$0xff] %vm83_vm0, %v435_v24  ;;  %v318_v25 = vpop.f32.mrb[3].mxu0 }
 0x145   :  { %s358_s2 = sshll.u32 %s641_s20, 4  ;;  %327 = vst.msk [vmem:[#allocation13] sm:$0xff] %vm83_vm0, %v318_v25  ;;  %s359_s2 = int_to_ptr.vmem [resolvable:$true] %s358_s2 }
 0x146   :  { %s601_s1 = scalar_lea.vmem %s359_s2, 256  ;;  %p606_p7 = scmp.lt.s32.totalorder %s359_s2, %s359_s2 }
 0x147   :  { %p602_p6 = scmp.ne.s32.totalorder %s359_s2, %s601_s1  ;;  %p607_p8 = scmp.lt.s32.totalorder %s601_s1, %s601_s1 }
 0x149   :  { %p608_p9 = por %p607_p8, %p606_p7 }
 0x14b   :  { %p609_p10 = pnand %p608_p9, %p602_p6 }
 0x14d   :  { %612 = shalt.err (!%p609_p10)
}
 0x14e   :  { %s613_s5 = scalar_lea.hbm %s821_s6, 256 }
 0x14f   :  { %p614_p11 = scmp.ne.s32.totalorder %s821_s6, %s613_s5  ;;  %p617_p12 = scmp.lt.u32.totalorder %s613_s5, %s821_s6 }
 0x151   :  { %p619_p13 = pnand %p617_p12, %p614_p11 }
 0x153   :  { %622 = shalt.err (!%p619_p13)
}
 0x154   :  { %364 = dma.vmem_to_hbm [thread:$0]  %s359_s2, 256, %s821_s6, [#allocation12], %s635_s9, %s635_s9, %s636_s10  }
 0x155   :  { %629 = dma.done.wait [#allocation4], 256  }
 0x156   :  { %630 = vsyncadd [#allocation4], 4294967040 }
 0x157   :  { %631 = dma.done.wait [#allocation12], 512  }
 0x158   :  { %632 = vsyncadd [#allocation12], 4294966784 }
 0x159   :  { %374 = vsyncpa [#allocation3], 1 }
 0x15a   :  { %375 = vsyncpa [#allocation6], 1 }
 0x15b   :  { %376 = vsyncpa [#allocation9], 1 }
 0x15c   :  { %377 = vsyncpa [#allocation4], 1 }
 0x15d   :  { %378 = vsyncpa [#allocation12], 1 }

</bundles_post_ra>
